<compile_context>
chip_gen: v7x
topology: tpu7x:2x2x1
jax: 0.10.0
libtpu: 0.0.40
codegen_flags: <defaults>
</compile_context>

<pallas_src>
import numpy as np

import jax
import jax.numpy as jnp
from jax import lax
from jax.experimental import pallas as pl
from jax.experimental.pallas import tpu as pltpu

EPS = 1e-5


# ----------------------------------------------------------------------------
# Fused SBlock kernel (single invocation, everything resident in VMEM).
#   x_ref    : (N, H, W*Cin)             lane-dense input (index = w*Cin + ci), f32
#   bw1_ref  : (3, W*Cin,  W*Cout)       banded conv1 weights (one slab per ky), bf16
#   bw2_ref  : (3, W*Cout, W*Cout)       banded conv2 weights, bf16
#   selm_ref : (W*Cout, Cout)            channel selector * 1/(N*H*W), f32
#   selT_ref : (Cout, W*Cout)            channel -> lane-dense broadcast selector, f32
#   g*/t*    : (1, W*Cout)               gamma / beta, lane-dense broadcast, f32
#   o_ref    : (N, H, W*Cout)            lane-dense output, f32
# ----------------------------------------------------------------------------
def _sblock_kernel(x_ref, bw1_ref, bw2_ref, selm_ref, selT_ref,
                   g1_ref, t1_ref, g2_ref, t2_ref, o_ref):
    N, H, WCin = x_ref.shape
    WCout = o_ref.shape[2]
    R = N * H

    # Hoisted parameter loads (each ref read exactly once).
    selm = selm_ref[...]
    selT = selT_ref[...]
    g1 = g1_ref[...]; t1 = t1_ref[...]
    g2 = g2_ref[...]; t2 = t2_ref[...]

    # Border-row masks for the +/-1-row (ky) halos: zero the rows that wrapped across
    # the top/bottom image border (and across batch boundaries) after the sublane roll.
    row = lax.broadcasted_iota(jnp.int32, (R, 1), 0)
    not_top = ((row % H) != 0).astype(jnp.float32)        # keep x[h-1] only if h != 0
    not_bot = ((row % H) != (H - 1)).astype(jnp.float32)  # keep x[h+1] only if h != H-1

    def conv3x3(z, bw_ref):
        # z: (R, WC*) f32 lane-dense activation.  bw_ref: (3, WC*, WCout) bf16.
        # "Same" conv = 3 banded matmuls (one per ky tap).  kx border taps are already
        # zero inside bw, so no width padding / lane offset is needed on the LHS.
        acc = jnp.dot(z.astype(jnp.bfloat16), bw_ref[1],
                      preferred_element_type=jnp.float32)                 # ky = 1 (center)
        z_dn = pltpu.roll(z, shift=1, axis=0) * not_top                   # row h-1
        acc = acc + jnp.dot(z_dn.astype(jnp.bfloat16), bw_ref[0],
                            preferred_element_type=jnp.float32)           # ky = 0
        z_up = pltpu.roll(z, shift=R - 1, axis=0) * not_bot               # row h+1
        acc = acc + jnp.dot(z_up.astype(jnp.bfloat16), bw_ref[2],
                            preferred_element_type=jnp.float32)           # ky = 2
        return acc

    def bn_relu(y, gamma_d, beta_d):
        # Training-mode BatchNorm with batch statistics (biased var), reduce-then-project.
        rs = jnp.sum(y, axis=0, keepdims=True)                                # (1, WC)
        mean_c = jnp.dot(rs, selm, preferred_element_type=jnp.float32)        # (1, C)
        mean_d = jnp.dot(mean_c, selT, preferred_element_type=jnp.float32)    # (1, WC)
        d = y - mean_d
        rs2 = jnp.sum(d * d, axis=0, keepdims=True)
        var_c = jnp.dot(rs2, selm, preferred_element_type=jnp.float32)
        var_d = jnp.dot(var_c, selT, preferred_element_type=jnp.float32)
        return jnp.maximum(d * (gamma_d * lax.rsqrt(var_d + EPS)) + beta_d, 0.0)

    xf = x_ref[...].reshape(R, WCin)              # major-dims-only collapse (layout free)
    z1 = bn_relu(conv3x3(xf, bw1_ref), g1, t1)    # conv1 -> BN1 -> ReLU
    z2 = bn_relu(conv3x3(z1, bw2_ref), g2, t2)    # conv2 -> BN2 -> ReLU
    o_ref[...] = z2.reshape(N, H, WCout).astype(o_ref.dtype)


# ----------------------------------------------------------------------------
# Wrapper glue (layout / weight preparation, NCHW <-> lane-dense NHWC)
# ----------------------------------------------------------------------------
def _banded_conv_weight(w_oihw, W):
    """(Cout, Cin, 3, 3) -> (3, W*Cin, W*Cout) bf16 block-banded per-ky-tap matrices.

    bw[ky][wp*Cin + ci, wq*Cout + co] = w[co, ci, ky, kx] where wp = wq + kx - 1.
    Out-of-range kx taps at the left/right border stay zero, so the activations need
    no width padding (lane offset 0, last dim stays W*C).
    """
    Cout, Cin, KH, KW = w_oihw.shape
    wt = jnp.transpose(w_oihw, (2, 3, 1, 0)).astype(jnp.float32)      # (ky, kx, ci, co)
    kx = np.arange(KW)[:, None, None]
    wp = np.arange(W)[None, :, None]
    wq = np.arange(W)[None, None, :]
    sel = jnp.asarray((wp == wq + kx - 1).astype(np.float32))         # (KW, W, W)
    bw = jnp.einsum('xpq,yxio->ypiqo', sel, wt)                       # (KH, W, Cin, W, Cout)
    return bw.reshape(KH, W * Cin, W * Cout).astype(jnp.bfloat16)


def _dense_lanes(v, W):
    """(C,) per-channel vector -> (1, W*C) lane-dense broadcast (index = w*C + c)."""
    return jnp.tile(v.astype(jnp.float32).reshape(1, -1), (1, W))


@jax.jit
def sblock_forward(x_nchw, w1, b1, gamma1, beta1, w2, b2, gamma2, beta2):
    # b1/b2 kept for API parity with the PyTorch module but unused: a per-channel
    # constant added before BatchNorm is exactly cancelled by the mean subtraction.
    del b1, b2
    N, Cin, H, W = x_nchw.shape
    Cout = w1.shape[0]

    # NCHW -> lane-dense (N, H, W*Cin).
    # TODO(synk): at production sizes keep activations lane-dense across blocks instead
    # of paying this transpose (a full HBM round trip) per SBlock.
    x = jnp.transpose(x_nchw, (0, 2, 3, 1)).astype(jnp.float32).reshape(N, H, W * Cin)

    bw1 = _banded_conv_weight(w1, W)                   # (3, W*Cin,  W*Cout) bf16
    bw2 = _banded_conv_weight(w2, W)                   # (3, W*Cout, W*Cout) bf16

    # Thin per-channel selector: sel[w*Cout + c, c] = 1.  Mean scale folded into selm.
    sel_np = np.kron(np.ones((W, 1), np.float32), np.eye(Cout, dtype=np.float32))
    selm = jnp.asarray(sel_np / float(N * H * W))      # (W*Cout, Cout)
    selT = jnp.asarray(sel_np.T)                       # (Cout, W*Cout)

    out = pl.pallas_call(
        _sblock_kernel,
        out_shape=jax.ShapeDtypeStruct((N, H, W * Cout), jnp.float32),
        compiler_params=pltpu.CompilerParams(vmem_limit_bytes=32 * 1024 * 1024),
    )(x, bw1, bw2, selm, selT,
      _dense_lanes(gamma1, W), _dense_lanes(beta1, W),
      _dense_lanes(gamma2, W), _dense_lanes(beta2, W))

    # lane-dense (N, H, W*Cout) -> NCHW
    return jnp.transpose(out.reshape(N, H, W, Cout), (0, 3, 1, 2))


# ----------------------------------------------------------------------------
# Pure-JAX reference (training-mode BatchNorm with batch statistics)
# ----------------------------------------------------------------------------
def sblock_reference(x, w1, b1, g1, be1, w2, b2, g2, be2):
    def conv(x, w, b):
        y = lax.conv_general_dilated(
            x, w, window_strides=(1, 1), padding=((1, 1), (1, 1)),
            dimension_numbers=("NCHW", "OIHW", "NCHW"))
        return y + b.reshape(1, -1, 1, 1)

    def bn_relu(y, g, be):
        mean = y.mean(axis=(0, 2, 3), keepdims=True)
        var = ((y - mean) ** 2).mean(axis=(0, 2, 3), keepdims=True)
        yhat = (y - mean) / jnp.sqrt(var + EPS)
        return jnp.maximum(yhat * g.reshape(1, -1, 1, 1) + be.reshape(1, -1, 1, 1), 0.0)

    y = bn_relu(conv(x, w1, b1), g1, be1)
    return bn_relu(conv(y, w2, b2), g2, be2)


if __name__ == "__main__":
    key = jax.random.PRNGKey(0)
    k_x, k_w1, k_w2, k_g1, k_b1, k_g2, k_b2 = jax.random.split(key, 7)

    N, Cin, Cout, H, W = 2, 4, 8, 16, 16

    x = jax.random.normal(k_x, (N, Cin, H, W), dtype=jnp.float32)

    # Deterministic "initializer": small normal weights; conv biases zero (as in module).
    w1 = 0.1 * jax.random.normal(k_w1, (Cout, Cin, 3, 3), dtype=jnp.float32)
    b1 = jnp.zeros((Cout,), jnp.float32)
    w2 = 0.1 * jax.random.normal(k_w2, (Cout, Cout, 3, 3), dtype=jnp.float32)
    b2 = jnp.zeros((Cout,), jnp.float32)
    # Non-trivial BN affine parameters to exercise the full epilogue.
    g1 = 1.0 + 0.1 * jax.random.normal(k_g1, (Cout,), dtype=jnp.float32)
    be1 = 0.1 * jax.random.normal(k_b1, (Cout,), dtype=jnp.float32)
    g2 = 1.0 + 0.1 * jax.random.normal(k_g2, (Cout,), dtype=jnp.float32)
    be2 = 0.1 * jax.random.normal(k_b2, (Cout,), dtype=jnp.float32)

    out = jax.block_until_ready(sblock_forward(x, w1, b1, g1, be1, w2, b2, g2, be2))
    ref = jax.block_until_ready(sblock_reference(x, w1, b1, g1, be1, w2, b2, g2, be2))

    assert out.shape == (N, Cout, H, W), out.shape
    max_err = float(jnp.max(jnp.abs(out - ref)))
    # Conv matmuls use bf16 MXU operands with f32 accumulation and an all-f32 BN/ReLU
    # epilogue; vs the all-f32 reference the expected max abs error is ~1e-2 at these
    # shapes, hence the 3e-2 tolerance (was 1e-3 for the all-f32 kernel).
    assert jnp.allclose(out, ref, rtol=3e-2, atol=3e-2), max_err

    print("KERNEL_OK")
</pallas_src>

<mosaic_0001>
module attributes {stable_mosaic.version = 11 : i64} {
  func.func @_sblock_kernel(%arg0: memref<2x16x64xf32, #tpu.memory_space<vmem>>, %arg1: memref<3x64x128xbf16, #tpu.memory_space<vmem>>, %arg2: memref<3x128x128xbf16, #tpu.memory_space<vmem>>, %arg3: memref<128x8xf32, #tpu.memory_space<vmem>>, %arg4: memref<8x128xf32, #tpu.memory_space<vmem>>, %arg5: memref<1x128xf32, #tpu.memory_space<vmem>>, %arg6: memref<1x128xf32, #tpu.memory_space<vmem>>, %arg7: memref<1x128xf32, #tpu.memory_space<vmem>>, %arg8: memref<1x128xf32, #tpu.memory_space<vmem>>, %arg9: memref<2x16x128xf32, #tpu.memory_space<vmem>>) attributes {dimension_semantics = [], scalar_prefetch = 0 : i64, scratch_operands = 0 : i64, tpu.core_type = #tpu.core_type<tc>} {
    %c0 = arith.constant 0 : index
    %c0_0 = arith.constant 0 : index
    %0 = vector.load %arg3[%c0, %c0_0] : memref<128x8xf32, #tpu.memory_space<vmem>>, vector<128x8xf32>
    %c0_1 = arith.constant 0 : index
    %c0_2 = arith.constant 0 : index
    %1 = vector.load %arg4[%c0_1, %c0_2] : memref<8x128xf32, #tpu.memory_space<vmem>>, vector<8x128xf32>
    %c0_3 = arith.constant 0 : index
    %c0_4 = arith.constant 0 : index
    %2 = vector.load %arg5[%c0_3, %c0_4] : memref<1x128xf32, #tpu.memory_space<vmem>>, vector<1x128xf32>
    %c0_5 = arith.constant 0 : index
    %c0_6 = arith.constant 0 : index
    %3 = vector.load %arg6[%c0_5, %c0_6] : memref<1x128xf32, #tpu.memory_space<vmem>>, vector<1x128xf32>
    %c0_7 = arith.constant 0 : index
    %c0_8 = arith.constant 0 : index
    %4 = vector.load %arg7[%c0_7, %c0_8] : memref<1x128xf32, #tpu.memory_space<vmem>>, vector<1x128xf32>
    %c0_9 = arith.constant 0 : index
    %c0_10 = arith.constant 0 : index
    %5 = vector.load %arg8[%c0_9, %c0_10] : memref<1x128xf32, #tpu.memory_space<vmem>>, vector<1x128xf32>
    %6 = tpu.iota {dimensions = array<i32: 0>} : vector<32x1xi32>
    %c16_i32 = arith.constant 16 : i32
    %c0_i32 = arith.constant 0 : i32
    %7 = arith.cmpi eq, %c16_i32, %c0_i32 : i32
    %c1_i32 = arith.constant 1 : i32
    %8 = arith.select %7, %c1_i32, %c16_i32 : i32
    %9 = vector.broadcast %8 : i32 to vector<32x1xi32>
    %10 = arith.remsi %6, %9 : vector<32x1xi32>
    %c0_i32_11 = arith.constant 0 : i32
    %11 = vector.broadcast %c0_i32_11 : i32 to vector<32x1xi32>
    %12 = arith.cmpi ne, %10, %11 : vector<32x1xi32>
    %c0_i32_12 = arith.constant 0 : i32
    %13 = vector.broadcast %c0_i32_12 : i32 to vector<32x1xi32>
    %14 = arith.cmpi slt, %10, %13 : vector<32x1xi32>
    %c0_i32_13 = arith.constant 0 : i32
    %15 = arith.cmpi slt, %8, %c0_i32_13 : i32
    %16 = vector.broadcast %15 : i1 to vector<32x1xi1>
    %17 = vector.broadcast %16 : vector<32x1xi1> to vector<32x1xi1>
    %18 = arith.xori %14, %17 : vector<32x1xi1>
    %19 = arith.andi %18, %12 : vector<32x1xi1>
    %20 = vector.broadcast %8 : i32 to vector<32x1xi32>
    %21 = arith.addi %10, %20 : vector<32x1xi32>
    %22 = arith.select %19, %21, %10 : vector<32x1xi1>, vector<32x1xi32>
    %c0_i32_14 = arith.constant 0 : i32
    %23 = vector.broadcast %c0_i32_14 : i32 to vector<32x1xi32>
    %24 = arith.cmpi ne, %22, %23 : vector<32x1xi32>
    %25 = arith.extui %24 : vector<32x1xi1> to vector<32x1xi32>
    %26 = arith.sitofp %25 : vector<32x1xi32> to vector<32x1xf32>
    %c16_i32_15 = arith.constant 16 : i32
    %c0_i32_16 = arith.constant 0 : i32
    %27 = arith.cmpi eq, %c16_i32_15, %c0_i32_16 : i32
    %c1_i32_17 = arith.constant 1 : i32
    %28 = arith.select %27, %c1_i32_17, %c16_i32_15 : i32
    %29 = vector.broadcast %28 : i32 to vector<32x1xi32>
    %30 = arith.remsi %6, %29 : vector<32x1xi32>
    %c0_i32_18 = arith.constant 0 : i32
    %31 = vector.broadcast %c0_i32_18 : i32 to vector<32x1xi32>
    %32 = arith.cmpi ne, %30, %31 : vector<32x1xi32>
    %c0_i32_19 = arith.constant 0 : i32
    %33 = vector.broadcast %c0_i32_19 : i32 to vector<32x1xi32>
    %34 = arith.cmpi slt, %30, %33 : vector<32x1xi32>
    %c0_i32_20 = arith.constant 0 : i32
    %35 = arith.cmpi slt, %28, %c0_i32_20 : i32
    %36 = vector.broadcast %35 : i1 to vector<32x1xi1>
    %37 = vector.broadcast %36 : vector<32x1xi1> to vector<32x1xi1>
    %38 = arith.xori %34, %37 : vector<32x1xi1>
    %39 = arith.andi %38, %32 : vector<32x1xi1>
    %40 = vector.broadcast %28 : i32 to vector<32x1xi32>
    %41 = arith.addi %30, %40 : vector<32x1xi32>
    %42 = arith.select %39, %41, %30 : vector<32x1xi1>, vector<32x1xi32>
    %c15_i32 = arith.constant 15 : i32
    %43 = vector.broadcast %c15_i32 : i32 to vector<32x1xi32>
    %44 = arith.cmpi ne, %42, %43 : vector<32x1xi32>
    %45 = arith.extui %44 : vector<32x1xi1> to vector<32x1xi32>
    %46 = arith.sitofp %45 : vector<32x1xi32> to vector<32x1xf32>
    %c0_21 = arith.constant 0 : index
    %c0_22 = arith.constant 0 : index
    %c0_23 = arith.constant 0 : index
    %47 = vector.load %arg0[%c0_21, %c0_22, %c0_23] : memref<2x16x64xf32, #tpu.memory_space<vmem>>, vector<2x16x64xf32>
    %48 = vector.shape_cast %47 : vector<2x16x64xf32> to vector<32x64xf32>
    %49 = arith.truncf %48 : vector<32x64xf32> to vector<32x64xbf16>
    %c1 = arith.constant 1 : index
    %c0_24 = arith.constant 0 : index
    %c0_25 = arith.constant 0 : index
    %50 = vector.load %arg1[%c1, %c0_24, %c0_25] : memref<3x64x128xbf16, #tpu.memory_space<vmem>>, vector<1x64x128xbf16>
    %51 = vector.shape_cast %50 : vector<1x64x128xbf16> to vector<64x128xbf16>
    %cst = arith.constant dense<0.000000e+00> : vector<32x128xf32>
    %52 = tpu.matmul %49, %51, %cst {dimension_numbers = #tpu.dot_dimension_numbers<[1], [0], [0], [1], [0, 0, 1, 1], [], []>} : vector<32x64xbf16>, vector<64x128xbf16>, vector<32x128xf32> -> vector<32x128xf32>
    %c1_i32_26 = arith.constant 1 : i32
    %53 = tpu.dynamic_rotate %48 by %c1_i32_26 dim 0 : vector<32x64xf32>, i32 -> vector<32x64xf32>
    %54 = vector.broadcast %26 : vector<32x1xf32> to vector<32x64xf32>
    %55 = arith.mulf %53, %54 : vector<32x64xf32>
    %56 = arith.truncf %55 : vector<32x64xf32> to vector<32x64xbf16>
    %c0_27 = arith.constant 0 : index
    %c0_28 = arith.constant 0 : index
    %c0_29 = arith.constant 0 : index
    %57 = vector.load %arg1[%c0_27, %c0_28, %c0_29] : memref<3x64x128xbf16, #tpu.memory_space<vmem>>, vector<1x64x128xbf16>
    %58 = vector.shape_cast %57 : vector<1x64x128xbf16> to vector<64x128xbf16>
    %cst_30 = arith.constant dense<0.000000e+00> : vector<32x128xf32>
    %59 = tpu.matmul %56, %58, %cst_30 {dimension_numbers = #tpu.dot_dimension_numbers<[1], [0], [0], [1], [0, 0, 1, 1], [], []>} : vector<32x64xbf16>, vector<64x128xbf16>, vector<32x128xf32> -> vector<32x128xf32>
    %60 = arith.addf %52, %59 : vector<32x128xf32>
    %c31_i32 = arith.constant 31 : i32
    %61 = tpu.dynamic_rotate %48 by %c31_i32 dim 0 : vector<32x64xf32>, i32 -> vector<32x64xf32>
    %62 = vector.broadcast %46 : vector<32x1xf32> to vector<32x64xf32>
    %63 = arith.mulf %61, %62 : vector<32x64xf32>
    %64 = arith.truncf %63 : vector<32x64xf32> to vector<32x64xbf16>
    %c2 = arith.constant 2 : index
    %c0_31 = arith.constant 0 : index
    %c0_32 = arith.constant 0 : index
    %65 = vector.load %arg1[%c2, %c0_31, %c0_32] : memref<3x64x128xbf16, #tpu.memory_space<vmem>>, vector<1x64x128xbf16>
    %66 = vector.shape_cast %65 : vector<1x64x128xbf16> to vector<64x128xbf16>
    %cst_33 = arith.constant dense<0.000000e+00> : vector<32x128xf32>
    %67 = tpu.matmul %64, %66, %cst_33 {dimension_numbers = #tpu.dot_dimension_numbers<[1], [0], [0], [1], [0, 0, 1, 1], [], []>} : vector<32x64xbf16>, vector<64x128xbf16>, vector<32x128xf32> -> vector<32x128xf32>
    %68 = arith.addf %60, %67 : vector<32x128xf32>
    %cst_34 = arith.constant dense<0.000000e+00> : vector<128xf32>
    %69 = vector.multi_reduction <add>, %68, %cst_34 [0] : vector<32x128xf32> to vector<128xf32>
    %70 = vector.shape_cast %69 : vector<128xf32> to vector<1x128xf32>
    %cst_35 = arith.constant dense<0.000000e+00> : vector<1x8xf32>
    %71 = tpu.matmul %70, %0, %cst_35 {dimension_numbers = #tpu.dot_dimension_numbers<[1], [0], [0], [1], [0, 0, 1, 1], [], []>} : vector<1x128xf32>, vector<128x8xf32>, vector<1x8xf32> -> vector<1x8xf32>
    %cst_36 = arith.constant dense<0.000000e+00> : vector<1x128xf32>
    %72 = tpu.matmul %71, %1, %cst_36 {dimension_numbers = #tpu.dot_dimension_numbers<[1], [0], [0], [1], [0, 0, 1, 1], [], []>} : vector<1x8xf32>, vector<8x128xf32>, vector<1x128xf32> -> vector<1x128xf32>
    %73 = vector.broadcast %72 : vector<1x128xf32> to vector<32x128xf32>
    %74 = arith.subf %68, %73 : vector<32x128xf32>
    %75 = arith.mulf %74, %74 : vector<32x128xf32>
    %cst_37 = arith.constant dense<0.000000e+00> : vector<128xf32>
    %76 = vector.multi_reduction <add>, %75, %cst_37 [0] : vector<32x128xf32> to vector<128xf32>
    %77 = vector.shape_cast %76 : vector<128xf32> to vector<1x128xf32>
    %cst_38 = arith.constant dense<0.000000e+00> : vector<1x8xf32>
    %78 = tpu.matmul %77, %0, %cst_38 {dimension_numbers = #tpu.dot_dimension_numbers<[1], [0], [0], [1], [0, 0, 1, 1], [], []>} : vector<1x128xf32>, vector<128x8xf32>, vector<1x8xf32> -> vector<1x8xf32>
    %cst_39 = arith.constant dense<0.000000e+00> : vector<1x128xf32>
    %79 = tpu.matmul %78, %1, %cst_39 {dimension_numbers = #tpu.dot_dimension_numbers<[1], [0], [0], [1], [0, 0, 1, 1], [], []>} : vector<1x8xf32>, vector<8x128xf32>, vector<1x128xf32> -> vector<1x128xf32>
    %cst_40 = arith.constant 9.99999974E-6 : f32
    %80 = vector.broadcast %cst_40 : f32 to vector<1x128xf32>
    %81 = arith.addf %79, %80 : vector<1x128xf32>
    %82 = math.rsqrt %81 : vector<1x128xf32>
    %83 = arith.mulf %2, %82 : vector<1x128xf32>
    %84 = vector.broadcast %83 : vector<1x128xf32> to vector<32x128xf32>
    %85 = arith.mulf %74, %84 : vector<32x128xf32>
    %86 = vector.broadcast %3 : vector<1x128xf32> to vector<32x128xf32>
    %87 = arith.addf %85, %86 : vector<32x128xf32>
    %cst_41 = arith.constant 0.000000e+00 : f32
    %88 = vector.broadcast %cst_41 : f32 to vector<32x128xf32>
    %89 = arith.maximumf %87, %88 : vector<32x128xf32>
    %90 = arith.truncf %89 : vector<32x128xf32> to vector<32x128xbf16>
    %c1_42 = arith.constant 1 : index
    %c0_43 = arith.constant 0 : index
    %c0_44 = arith.constant 0 : index
    %91 = vector.load %arg2[%c1_42, %c0_43, %c0_44] : memref<3x128x128xbf16, #tpu.memory_space<vmem>>, vector<1x128x128xbf16>
    %92 = vector.shape_cast %91 : vector<1x128x128xbf16> to vector<128x128xbf16>
    %cst_45 = arith.constant dense<0.000000e+00> : vector<32x128xf32>
    %93 = tpu.matmul %90, %92, %cst_45 {dimension_numbers = #tpu.dot_dimension_numbers<[1], [0], [0], [1], [0, 0, 1, 1], [], []>} : vector<32x128xbf16>, vector<128x128xbf16>, vector<32x128xf32> -> vector<32x128xf32>
    %c1_i32_46 = arith.constant 1 : i32
    %94 = tpu.dynamic_rotate %89 by %c1_i32_46 dim 0 : vector<32x128xf32>, i32 -> vector<32x128xf32>
    %95 = vector.broadcast %26 : vector<32x1xf32> to vector<32x128xf32>
    %96 = arith.mulf %94, %95 : vector<32x128xf32>
    %97 = arith.truncf %96 : vector<32x128xf32> to vector<32x128xbf16>
    %c0_47 = arith.constant 0 : index
    %c0_48 = arith.constant 0 : index
    %c0_49 = arith.constant 0 : index
    %98 = vector.load %arg2[%c0_47, %c0_48, %c0_49] : memref<3x128x128xbf16, #tpu.memory_space<vmem>>, vector<1x128x128xbf16>
    %99 = vector.shape_cast %98 : vector<1x128x128xbf16> to vector<128x128xbf16>
    %cst_50 = arith.constant dense<0.000000e+00> : vector<32x128xf32>
    %100 = tpu.matmul %97, %99, %cst_50 {dimension_numbers = #tpu.dot_dimension_numbers<[1], [0], [0], [1], [0, 0, 1, 1], [], []>} : vector<32x128xbf16>, vector<128x128xbf16>, vector<32x128xf32> -> vector<32x128xf32>
    %101 = arith.addf %93, %100 : vector<32x128xf32>
    %c31_i32_51 = arith.constant 31 : i32
    %102 = tpu.dynamic_rotate %89 by %c31_i32_51 dim 0 : vector<32x128xf32>, i32 -> vector<32x128xf32>
    %103 = vector.broadcast %46 : vector<32x1xf32> to vector<32x128xf32>
    %104 = arith.mulf %102, %103 : vector<32x128xf32>
    %105 = arith.truncf %104 : vector<32x128xf32> to vector<32x128xbf16>
    %c2_52 = arith.constant 2 : index
    %c0_53 = arith.constant 0 : index
    %c0_54 = arith.constant 0 : index
    %106 = vector.load %arg2[%c2_52, %c0_53, %c0_54] : memref<3x128x128xbf16, #tpu.memory_space<vmem>>, vector<1x128x128xbf16>
    %107 = vector.shape_cast %106 : vector<1x128x128xbf16> to vector<128x128xbf16>
    %cst_55 = arith.constant dense<0.000000e+00> : vector<32x128xf32>
    %108 = tpu.matmul %105, %107, %cst_55 {dimension_numbers = #tpu.dot_dimension_numbers<[1], [0], [0], [1], [0, 0, 1, 1], [], []>} : vector<32x128xbf16>, vector<128x128xbf16>, vector<32x128xf32> -> vector<32x128xf32>
    %109 = arith.addf %101, %108 : vector<32x128xf32>
    %cst_56 = arith.constant dense<0.000000e+00> : vector<128xf32>
    %110 = vector.multi_reduction <add>, %109, %cst_56 [0] : vector<32x128xf32> to vector<128xf32>
    %111 = vector.shape_cast %110 : vector<128xf32> to vector<1x128xf32>
    %cst_57 = arith.constant dense<0.000000e+00> : vector<1x8xf32>
    %112 = tpu.matmul %111, %0, %cst_57 {dimension_numbers = #tpu.dot_dimension_numbers<[1], [0], [0], [1], [0, 0, 1, 1], [], []>} : vector<1x128xf32>, vector<128x8xf32>, vector<1x8xf32> -> vector<1x8xf32>
    %cst_58 = arith.constant dense<0.000000e+00> : vector<1x128xf32>
    %113 = tpu.matmul %112, %1, %cst_58 {dimension_numbers = #tpu.dot_dimension_numbers<[1], [0], [0], [1], [0, 0, 1, 1], [], []>} : vector<1x8xf32>, vector<8x128xf32>, vector<1x128xf32> -> vector<1x128xf32>
    %114 = vector.broadcast %113 : vector<1x128xf32> to vector<32x128xf32>
    %115 = arith.subf %109, %114 : vector<32x128xf32>
    %116 = arith.mulf %115, %115 : vector<32x128xf32>
    %cst_59 = arith.constant dense<0.000000e+00> : vector<128xf32>
    %117 = vector.multi_reduction <add>, %116, %cst_59 [0] : vector<32x128xf32> to vector<128xf32>
    %118 = vector.shape_cast %117 : vector<128xf32> to vector<1x128xf32>
    %cst_60 = arith.constant dense<0.000000e+00> : vector<1x8xf32>
    %119 = tpu.matmul %118, %0, %cst_60 {dimension_numbers = #tpu.dot_dimension_numbers<[1], [0], [0], [1], [0, 0, 1, 1], [], []>} : vector<1x128xf32>, vector<128x8xf32>, vector<1x8xf32> -> vector<1x8xf32>
    %cst_61 = arith.constant dense<0.000000e+00> : vector<1x128xf32>
    %120 = tpu.matmul %119, %1, %cst_61 {dimension_numbers = #tpu.dot_dimension_numbers<[1], [0], [0], [1], [0, 0, 1, 1], [], []>} : vector<1x8xf32>, vector<8x128xf32>, vector<1x128xf32> -> vector<1x128xf32>
    %cst_62 = arith.constant 9.99999974E-6 : f32
    %121 = vector.broadcast %cst_62 : f32 to vector<1x128xf32>
    %122 = arith.addf %120, %121 : vector<1x128xf32>
    %123 = math.rsqrt %122 : vector<1x128xf32>
    %124 = arith.mulf %4, %123 : vector<1x128xf32>
    %125 = vector.broadcast %124 : vector<1x128xf32> to vector<32x128xf32>
    %126 = arith.mulf %115, %125 : vector<32x128xf32>
    %127 = vector.broadcast %5 : vector<1x128xf32> to vector<32x128xf32>
    %128 = arith.addf %126, %127 : vector<32x128xf32>
    %cst_63 = arith.constant 0.000000e+00 : f32
    %129 = vector.broadcast %cst_63 : f32 to vector<32x128xf32>
    %130 = arith.maximumf %128, %129 : vector<32x128xf32>
    %131 = vector.shape_cast %130 : vector<32x128xf32> to vector<2x16x128xf32>
    %c0_64 = arith.constant 0 : index
    %c0_65 = arith.constant 0 : index
    %c0_66 = arith.constant 0 : index
    %132 = vector.load %arg9[%c0_64, %c0_65, %c0_66] : memref<2x16x128xf32, #tpu.memory_space<vmem>>, vector<2x16x128xf32>
    tpu.vector_store %arg9[%c0_64, %c0_65, %c0_66], %131 {strides = array<i32>} : memref<2x16x128xf32, #tpu.memory_space<vmem>>, vector<2x16x128xf32>,
    return
  }
}

</mosaic_0001>

<bundles_post_ra>
// kernel: sblock_forward.1
= control target key start
LH: loop header
LB: loop body
LE: loop exit
PB: predicated region body
PF: predicated region fallthrough
CT: control target
= control target key end

     0   :  { %v54_v0 = vlaneseq  ;;  %v2138_v2 = vmov 0.0|0.0   ;;  %v2139_v14 = vmov 0.0   ;;  %vm193_vm2 = vcmask 523264   ;;  %s2609_s1 = inlined_call_operand.vmem [shape: bf16[3,64,128], index: 1, kind: input, shape index: {}]   ;;  %s2610_s0 = inlined_call_operand.vmem [shape: f32[2,16,64], index: 0, kind: input, shape index: {}]   ;;  %s2611_s3 = inlined_call_operand.vmem [shape: f32[128,8], index: 3, kind: input, shape index: {}]   ;;  %s2612_s4 = inlined_call_operand.vmem [shape: f32[8,128], index: 4, kind: input, shape index: {}]   ;;  %s2613_s2 = inlined_call_operand.vmem [shape: bf16[3,128,128], index: 2, kind: input, shape index: {}]   ;;  %s2614_s5 = inlined_call_operand.vmem [shape: f32[1,128], index: 5, kind: input, shape index: {}]   ;;  %s2615_s6 = inlined_call_operand.vmem [shape: f32[1,128], index: 6, kind: input, shape index: {}]   ;;  %s2616_s7 = inlined_call_operand.vmem [shape: f32[1,128], index: 7, kind: input, shape index: {}]   ;;  %s2617_s8 = inlined_call_operand.vmem [shape: f32[1,128], index: 8, kind: input, shape index: {}]   ;;  %s2618_s9 = inlined_call_operand.vmem [shape: f32[2,16,128], index: 9, kind: output, shape index: {}]  }
   0x1   :  { %v2098_v1 = vld [vmem:[%s2609_s1] sm:$0xff]   ;;  %1983 = vmatprep.subr.bf16.mxu1 %v2138_v2  ;;  %v2099_v3 = vld [vmem:[%s2609_s1 + $0x8] sm:$0xff]   ;;  %v2100_v5 = vld [vmem:[%s2609_s1 + $0x10] sm:$0xff]   ;;  %vm2140_vm7 = vmmov 0   ;;  %vm514_vm8 = vcmask 64512  }
   0x2   :  { %v2198_v4 = vshrl.u32 %v54_v0, 7  ;;  %1727 = vmatprep.subr.bf16.mxu0 %v2098_v1  ;;  %v2207_v7 = vld [vmem:[%s2610_s0] sm:$0xff]  ;;  %v2212_v8 = vld [vmem:[%s2610_s0 + $0x8] sm:$0xff]  ;;  %v2217_v9 = vld [vmem:[%s2610_s0 + $0x18] sm:$0xff]  ;;  %1795 = vmatprep.mubr.msk.f32.mxu1 %vm2140_vm7, %v2139_v14 }
   0x3   :  { %1728 = vmatpush3.bf16.msra.mxu0 %v2098_v1  ;;  %v146_v11 = vrot.slane %v2207_v7, 7  ;;  %v147_v12 = vrot.slane %v2212_v8, 7  ;;  %v149_v13 = vrot.slane %v2217_v9, 7  ;;  %v2234_v19 = vld [vmem:[%s2610_s0 + $0x10] sm:$0xff]  ;;  %v2101_v20 = vld [vmem:[%s2609_s1 + $0x18] sm:$0xff]   ;;  %v2102_v28 = vld [vmem:[%s2609_s1 + $0x20] sm:$0xff]   ;;  %v135_v31 = vpack.c.bf16 %v2212_v8, %v2207_v7 }
   0x4   :  { %v63_v6 = vand.u32 15, %v2198_v4  ;;  %1729 = vmatprep.subr.bf16.mxu0 %v2099_v3  ;;  %vm150_vm0 = vcmp.lt.s32.totalorder %v2198_v4, 1  ;;  %v57_v10 = vadd.s32 16, %v2198_v4  ;;  %v148_v22 = vrot.slane %v2234_v19, 7  ;;  %v33_v32 = vld [vmem:[%s2611_s3] sm:$0xff]  ;;  %v34_v33 = vld [vmem:[%s2611_s3 + $0x8] sm:$0xff] }
   0x5   :  { %v153_v16 = vsel %vm150_vm0, %v146_v11, %v147_v12  ;;  %v154_v17 = vsel %vm150_vm0, %v149_v13, %v146_v11  ;;  %v56_v29 = vadd.s32 8, %v2198_v4  ;;  %v35_v34 = vld [vmem:[%s2611_s3 + $0x10] sm:$0xff]  ;;  %v2103_v35 = vld [vmem:[%s2609_s1 + $0x28] sm:$0xff]   ;;  %v2268_v36 = vpack.c.bf16 %v34_v33, %v33_v32  ;;  %v36_v37 = vld [vmem:[%s2611_s3 + $0x18] sm:$0xff] }
   0x6   :  { %vm107_vm1 = vcmp.ne.s32.totalorder %v63_v6, 0  ;;  %v77_v18 = vand.u32 15, %v57_v10  ;;  %v152_v25 = vsel %vm150_vm0, %v147_v12, %v148_v22  ;;  %v151_v26 = vsel %vm150_vm0, %v148_v22, %v149_v13  ;;  %v37_v40 = vld [vmem:[%s2611_s3 + $0x20] sm:$0xff]  ;;  %v38_v41 = vld [vmem:[%s2611_s3 + $0x28] sm:$0xff]  ;;  %v2104_v43 = vld [vmem:[%s2609_s1 + $0x30] sm:$0xff]  }
   0x7   :  { %v2225_v15 = vsel %vm107_vm1, 1.0, %v2139_v14  ;;  %1730 = vmatpush3.bf16.msra.mxu0 %v2099_v3  ;;  %v70_v38 = vand.u32 15, %v56_v29  ;;  %1985 = vmatpush3.bf16.msra.mxu1 %v2268_v36  ;;  %v2275_v39 = vpack.c.bf16 %v36_v37, %v35_v34  ;;  %v329_v42 = vrot.slane %v2212_v8, 1  ;;  %v2105_v47 = vld [vmem:[%s2609_s1 + $0x38] sm:$0xff]   ;;  %v2106_v51 = vld [vmem:[%s2609_s1 + $0x40] sm:$0xff]   ;;  %v2107_v56 = vld [vmem:[%s2609_s1 + $0x48] sm:$0xff]  }
   0x8   :  { %1731 = vmatprep.subr.bf16.mxu0 %v2100_v5  ;;  %v155_v21 = vmul.f32 %v2225_v15, %v154_v17  ;;  %vm109_vm3 = vcmp.ne.s32.totalorder %v77_v18, 0  ;;  %v330_v44 = vrot.slane %v2234_v19, 1  ;;  %1986 = vmatprep.subr.bf16.mxu1 %v2138_v2  ;;  %vm332_vm5 = vcmp.lt.s32.totalorder %v2198_v4, 7  ;;  %v2108_v59 = vld [vmem:[%s2609_s1 + $0x50] sm:$0xff]   ;;  %v2109_v62 = vld [vmem:[%s2609_s1 + $0x58] sm:$0xff]   ;;  %v42_v8 = vld [vmem:[%s2611_s3 + $0x48] sm:$0xff] }
   0x9   :  { %v2242_v24 = vsel %vm109_vm3, 1.0, %v2139_v14  ;;  %vm120_vm4 = vcmp.ne.s32.totalorder %v70_v38, 15  ;;  %v2292_v45 = vpack.c.bf16 %v38_v41, %v37_v40  ;;  %v328_v46 = vrot.slane %v2207_v7, 1  ;;  %v39_v3 = vld [vmem:[%s2611_s3 + $0x30] sm:$0xff]  ;;  %v41_v7 = vld [vmem:[%s2611_s3 + $0x40] sm:$0xff]  ;;  %v44_v11 = vld [vmem:[%s2611_s3 + $0x58] sm:$0xff] }
   0xa   :  { %v159_v23 = vpack.c.bf16 %v153_v16, %v155_v21  ;;  %v157_v27 = vmul.f32 %v2242_v24, %v152_v25  ;;  %v2300_v48 = vsel %vm120_vm4, 1.0, %v2139_v14  ;;  %v334_v49 = vsel %vm332_vm5, %v329_v42, %v330_v44  ;;  %v43_v10 = vld [vmem:[%s2611_s3 + $0x50] sm:$0xff]  ;;  %v45_v13 = vld [vmem:[%s2611_s3 + $0x60] sm:$0xff]  ;;  %v46_v16 = vld [vmem:[%s2611_s3 + $0x68] sm:$0xff] }
   0xb   :  { %1732 = vmatpush3.bf16.msra.mxu0 %v2100_v5  ;;  %1988 = vmatpush3.bf16.msra.mxu1 %v2275_v39  ;;  %v338_v50 = vmul.f32 %v2300_v48, %v334_v49  ;;  %v335_v52 = vsel %vm332_vm5, %v328_v46, %v329_v42  ;;  %v58_v53 = vadd.s32 24, %v2198_v4  ;;  %v136_v54 = vpack.c.bf16 %v2217_v9, %v2234_v19  ;;  %v40_v5 = vld [vmem:[%s2611_s3 + $0x38] sm:$0xff]  ;;  %v47_v17 = vld [vmem:[%s2611_s3 + $0x70] sm:$0xff] }
   0xc   :  { %1733 = vmatprep.subr.bf16.mxu0 %v2101_v20  ;;  %1735 = vmatprep.mubr.msk.bf16.mxu0 %vm193_vm2, %v159_v23  ;;  %v160_v30 = vpack.c.bf16 %v151_v26, %v157_v27  ;;  %v331_v58 = vrot.slane %v2217_v9, 1  ;;  %v2342_v6 = vpack.c.bf16 %v40_v5, %v39_v3  ;;  %v2352_v9 = vpack.c.bf16 %v42_v8, %v41_v7  ;;  %v48_v19 = vld [vmem:[%s2611_s3 + $0x78] sm:$0xff]  ;;  %v2111_v5 = vld [vmem:[%s2613_s2 + $0x8] sm:$0xff]   ;;  %v2112_v7 = vld [vmem:[%s2613_s2 + $0x10] sm:$0xff]  }
   0xd   :  { %1989 = vmatprep.subr.bf16.mxu1 %v2138_v2  ;;  %v341_v55 = vpack.c.bf16 %v338_v50, %v335_v52  ;;  %v84_v57 = vand.u32 15, %v58_v53  ;;  %v2362_v12 = vpack.c.bf16 %v44_v11, %v43_v10  ;;  %v2375_v18 = vpack.c.bf16 %v46_v16, %v45_v13  ;;  %v2113_v8 = vld [vmem:[%s2613_s2 + $0x18] sm:$0xff]   ;;  %v2114_v10 = vld [vmem:[%s2613_s2 + $0x20] sm:$0xff]   ;;  %v2115_v11 = vld [vmem:[%s2613_s2 + $0x28] sm:$0xff]  }
   0xe   :  { %v336_v61 = vsel %vm332_vm5, %v331_v58, %v328_v46  ;;  %v333_v0 = vsel %vm332_vm5, %v330_v44, %v331_v58  ;;  %v2417_v40 = vsub.s32 0, %v2198_v4  ;;  %v2116_v13 = vld [vmem:[%s2613_s2 + $0x30] sm:$0xff]   ;;  %v2117_v16 = vld [vmem:[%s2613_s2 + $0x38] sm:$0xff]  }
   0xf   :  { %1734 = vmatpush3.bf16.msra.mxu0 %v2101_v20  ;;  %1991 = vmatpush3.bf16.msra.mxu1 %v2292_v45  ;;  %vm122_vm6 = vcmp.ne.s32.totalorder %v84_v57, 15  ;;  %v2383_v20 = vpack.c.bf16 %v48_v19, %v47_v17  ;;  %v2118_v17 = vld [vmem:[%s2613_s2 + $0x40] sm:$0xff]   ;;  %v2129_v4 = vld [vmem:[%s2613_s2 + $0x98] sm:$0xff]  }
  0x10   :  { %1739 = vmatprep.subr.bf16.mxu0 %v2102_v28  ;;  %1992 = vmatprep.subr.bf16.mxu1 %v2138_v2  ;;  %v2325_v60 = vsel %vm122_vm6, 1.0, %v2139_v14 }
  0x11   :  { %v340_v63 = vmul.f32 %v2325_v60, %v336_v61 }
  0x12   :  { %1736 = vmatmul.mubr.msk.bf16.vlgmr.msra.gmra.mrb[0].mxu0 %vm193_vm2, %v160_v30 }
  0x13   :  { %1740 = vmatpush3.bf16.msra.mxu0 %v2102_v28  ;;  %1747 = vmatprep.mubr.msk.bf16.mxu0 %vm193_vm2, %v135_v31  ;;  %v342_v1 = vpack.c.bf16 %v340_v63, %v333_v0  ;;  %v2110_v0 = vld [vmem:[%s2613_s2] sm:$0xff]  }
  0x14   :  { %1741 = vmatprep.subr.bf16.mxu0 %v2103_v35  ;;  %1994 = vmatpush3.bf16.msra.mxu1 %v2342_v6 }
  0x15   :  { %1995 = vmatprep.subr.bf16.mxu1 %v2138_v2 }
  0x17   :  { %1742 = vmatpush3.bf16.msra.mxu0 %v2103_v35  ;;  %v2391_v35 = vld [vmem:[%s2612_s4] sm:$0xff] }
  0x18   :  { %1743 = vmatprep.subr.bf16.mxu0 %v2104_v43  ;;  %1997 = vmatpush3.bf16.msra.mxu1 %v2352_v9 }
  0x19   :  { %1998 = vmatprep.subr.bf16.mxu1 %v2138_v2 }
  0x1b   :  { %1744 = vmatpush3.bf16.msra.mxu0 %v2104_v43 }
  0x1c   :  { %1745 = vmatprep.subr.bf16.mxu0 %v2105_v47  ;;  %2000 = vmatpush3.bf16.msra.mxu1 %v2362_v12 }
  0x1d   :  { %2001 = vmatprep.subr.bf16.mxu1 %v2138_v2 }
  0x1f   :  { %1746 = vmatpush3.bf16.msra.mxu0 %v2105_v47 }
  0x20   :  { %1751 = vmatprep.subr.bf16.mxu0 %v2106_v51  ;;  %2003 = vmatpush3.bf16.msra.mxu1 %v2375_v18 }
  0x21   :  { %2004 = vmatprep.subr.bf16.mxu1 %v2138_v2 }
  0x22   :  { %1748 = vmatmul.mubr.msk.bf16.vlgmr.msra.gmra.mrb[0].mxu0 %vm193_vm2, %v136_v54 }
  0x23   :  { %1752 = vmatpush3.bf16.msra.mxu0 %v2106_v51  ;;  %1759 = vmatprep.mubr.msk.bf16.mxu0 %vm193_vm2, %v341_v55 }
  0x24   :  { %1753 = vmatprep.subr.bf16.mxu0 %v2107_v56  ;;  %2006 = vmatpush3.bf16.msra.mxu1 %v2383_v20 }
  0x25   :  { %1798 = vmatprep.subr.mxu1 %v2139_v14 }
  0x27   :  { %1754 = vmatpush3.bf16.msra.mxu0 %v2107_v56 }
  0x28   :  { %1755 = vmatprep.subr.bf16.mxu0 %v2108_v59 }
  0x2b   :  { %1756 = vmatpush3.bf16.msra.mxu0 %v2108_v59 }
  0x2c   :  { %1757 = vmatprep.subr.bf16.mxu0 %v2109_v62 }
  0x2f   :  { %1758 = vmatpush3.bf16.msra.mxu0 %v2109_v62 }
  0x30   :  { %1843 = vmatprep.subr.bf16.mxu0 %v2110_v0 }
  0x32   :  { %1760 = vmatmul.mubr.msk.bf16.vlgmr.msra.gmra.mrb[0].mxu0 %vm193_vm2, %v342_v1 }
  0x33   :  { %1844 = vmatpush3.bf16.msra.mxu0 %v2110_v0 }
  0x34   :  { %1845 = vmatprep.subr.bf16.mxu0 %v2111_v5 }
  0x37   :  { %1846 = vmatpush3.bf16.msra.mxu0 %v2111_v5  ;;  %v2120_v5 = vld [vmem:[%s2613_s2 + $0x50] sm:$0xff]  }
  0x38   :  { %1847 = vmatprep.subr.bf16.mxu0 %v2112_v7 }
  0x3b   :  { %1848 = vmatpush3.bf16.msra.mxu0 %v2112_v7  ;;  %v2121_v7 = vld [vmem:[%s2613_s2 + $0x58] sm:$0xff]  }
  0x3c   :  { %1849 = vmatprep.subr.bf16.mxu0 %v2113_v8 }
  0x3f   :  { %1850 = vmatpush3.bf16.msra.mxu0 %v2113_v8  ;;  %v2123_v8 = vld [vmem:[%s2613_s2 + $0x68] sm:$0xff]  }
  0x40   :  { %1851 = vmatprep.subr.bf16.mxu0 %v2114_v10 }
  0x43   :  { %1852 = vmatpush3.bf16.msra.mxu0 %v2114_v10  ;;  %v2124_v10 = vld [vmem:[%s2613_s2 + $0x70] sm:$0xff]  }
  0x44   :  { %1853 = vmatprep.subr.bf16.mxu0 %v2115_v11 }
  0x47   :  { %1854 = vmatpush3.bf16.msra.mxu0 %v2115_v11 }
  0x48   :  { %1855 = vmatprep.subr.bf16.mxu0 %v2116_v13 }
  0x4b   :  { %1856 = vmatpush3.bf16.msra.mxu0 %v2116_v13  ;;  %v2125_v13 = vld [vmem:[%s2613_s2 + $0x78] sm:$0xff]  }
  0x4c   :  { %1857 = vmatprep.subr.bf16.mxu0 %v2117_v16 }
  0x4f   :  { %1858 = vmatpush3.bf16.msra.mxu0 %v2117_v16 }
  0x50   :  { %1863 = vmatprep.subr.bf16.mxu0 %v2118_v17 }
 0x105   :  { %v1761_v21 = vpop.f32.mrb[0].mxu0 }
 0x106   :  { %v416_v22 = vpop.f32.mrb[1].mxu0 }
 0x107   :  { %v1762_v23 = vpop.f32.mrb[2].mxu0 }
 0x108   :  { %v419_v25 = vpop.f32.mrb[3].mxu0 }
 0x109   :  { %v435_v26 = vadd.f32 %v419_v25, %v416_v22 }
 0x10b   :  { %v436_v27 = vadd.f32 %v1761_v21, %v435_v26 }
 0x10d   :  { %v437_v28 = vadd.f32 %v1762_v23, %v436_v27 }
 0x10f   :  { %v438_v29 = vrot.slane %v437_v28, 4 }
 0x111   :  { %v439_v30 = vadd.f32 %v438_v29, %v437_v28  ;;  %v1543_v28 = vld [vmem:[%s2615_s6] ss:$0 sm:$0xff] }
 0x113   :  { %v440_v31 = vrot.slane %v439_v30, 2 }
 0x115   :  { %v441_v32 = vadd.f32 %v440_v31, %v439_v30 }
 0x117   :  { %v442_v33 = vrot.slane %v441_v32, 1 }
 0x119   :  { %v443_v34 = vadd.f32 %v442_v33, %v441_v32 }
 0x11b   :  { %1796 = vmatmul.mubr.f32.vlgmr.msra.gmra.mrb[0].mxu1 %v443_v34 }
 0x11c   :  { %1799 = vmatpush3.msra.mxu1 %v2391_v35  ;;  %1800 = vmatprep.mubr.msk.f32.mxu1 %vm2140_vm7, %v2139_v14 }
 0x11d   :  { %2007 = vmatprep.subr.bf16.mxu1 %v2138_v2 }
 0x1ee   :  { %v510_v37 = vpop.f32.mrb[0].mxu1 }
 0x1ef   :  { %v1797_v38 = vpop.f32.mrb[1].mxu1  ;;  %1801 = vmatmul.mubr.msk.f32.vlgmr.msra.gmra.mrb[2].mxu1 %vm514_vm8, %v510_v37 }
 0x1f0   :  { %2009 = vmatpush3.bf16.msra.mxu1 %v2268_v36  ;;  %1835 = vmatprep.mubr.msk.f32.mxu1 %vm2140_vm7, %v2139_v14 }
 0x1f1   :  { %2010 = vmatprep.subr.bf16.mxu1 %v2138_v2 }
 0x1f4   :  { %2012 = vmatpush3.bf16.msra.mxu1 %v2275_v39 }
 0x1f5   :  { %2013 = vmatprep.subr.bf16.mxu1 %v2138_v2 }
 0x1f8   :  { %2015 = vmatpush3.bf16.msra.mxu1 %v2292_v45 }
 0x1f9   :  { %2016 = vmatprep.subr.bf16.mxu1 %v2138_v2 }
 0x1fc   :  { %2018 = vmatpush3.bf16.msra.mxu1 %v2342_v6 }
 0x1fd   :  { %2019 = vmatprep.subr.bf16.mxu1 %v2138_v2 }
 0x200   :  { %2021 = vmatpush3.bf16.msra.mxu1 %v2352_v9 }
 0x201   :  { %2022 = vmatprep.subr.bf16.mxu1 %v2138_v2 }
 0x204   :  { %2024 = vmatpush3.bf16.msra.mxu1 %v2362_v12 }
 0x205   :  { %2025 = vmatprep.subr.bf16.mxu1 %v2138_v2 }
 0x208   :  { %2027 = vmatpush3.bf16.msra.mxu1 %v2375_v18 }
 0x209   :  { %2028 = vmatprep.subr.bf16.mxu1 %v2138_v2 }
 0x20c   :  { %2030 = vmatpush3.bf16.msra.mxu1 %v2383_v20 }
 0x20d   :  { %1838 = vmatprep.subr.mxu1 %v2139_v14 }
 0x2c2   :  { %v584_v41 = vpop.f32.mrb[2].mxu1 }
 0x2c3   :  { %v591_v42 = vrot.slane %v584_v41, %v2417_v40  ;;  %v1802_v43 = vpop.f32.mrb[3].mxu1 }
 0x2c5   :  { %v2420_v44 = vsub.f32 %v416_v22, %v591_v42  ;;  %v2422_v46 = vsub.f32 %v419_v25, %v591_v42  ;;  %v2424_v47 = vsub.f32 %v1761_v21, %v591_v42  ;;  %v2426_v49 = vsub.f32 %v1762_v23, %v591_v42  ;;  %v50_v23 = vld [vmem:[%s2614_s5] sm:$0x1] }
 0x2c7   :  { %v596_v50 = vmul.f32 %v2420_v44, %v2420_v44  ;;  %v597_v51 = vmul.f32 %v2422_v46, %v2422_v46  ;;  %v598_v52 = vmul.f32 %v2424_v47, %v2424_v47  ;;  %v599_v54 = vmul.f32 %v2426_v49, %v2426_v49 }
 0x2c9   :  { %v600_v53 = vadd.f32 %v597_v51, %v596_v50 }
 0x2cb   :  { %v601_v55 = vadd.f32 %v600_v53, %v598_v52 }
 0x2cd   :  { %v602_v56 = vadd.f32 %v601_v55, %v599_v54 }
 0x2cf   :  { %v603_v57 = vrot.slane %v602_v56, 4 }
 0x2d1   :  { %v604_v58 = vadd.f32 %v603_v57, %v602_v56 }
 0x2d3   :  { %v605_v59 = vrot.slane %v604_v58, 2 }
 0x2d5   :  { %v606_v61 = vadd.f32 %v605_v59, %v604_v58 }
 0x2d7   :  { %v607_v62 = vrot.slane %v606_v61, 1 }
 0x2d9   :  { %v608_v63 = vadd.f32 %v607_v62, %v606_v61 }
 0x2db   :  { %1836 = vmatmul.mubr.f32.vlgmr.msra.gmra.mrb[4].mxu1 %v608_v63  ;;  %v2119_v63 = vld [vmem:[%s2613_s2 + $0x48] sm:$0xff]  }
 0x2dc   :  { %1839 = vmatpush3.msra.mxu1 %v2391_v35  ;;  %1840 = vmatprep.mubr.msk.f32.mxu1 %vm2140_vm7, %v2139_v14 }
 0x2dd   :  { %2031 = vmatprep.subr.bf16.mxu1 %v2138_v2 }
 0x3ae   :  { %v675_v1 = vpop.f32.mrb[4].mxu1 }
 0x3af   :  { %v1837_v3 = vpop.f32.mrb[5].mxu1  ;;  %1841 = vmatmul.mubr.msk.f32.vlgmr.msra.gmra.mrb[6].mxu1 %vm514_vm8, %v675_v1 }
 0x3b0   :  { %2033 = vmatpush3.bf16.msra.mxu1 %v2268_v36  ;;  %1935 = vmatprep.mubr.msk.f32.mxu1 %vm2140_vm7, %v2139_v14 }
 0x3b1   :  { %2034 = vmatprep.subr.bf16.mxu1 %v2138_v2 }
 0x3b4   :  { %2036 = vmatpush3.bf16.msra.mxu1 %v2275_v39 }
 0x3b5   :  { %2037 = vmatprep.subr.bf16.mxu1 %v2138_v2 }
 0x3b8   :  { %2039 = vmatpush3.bf16.msra.mxu1 %v2292_v45 }
 0x3b9   :  { %2040 = vmatprep.subr.bf16.mxu1 %v2138_v2 }
 0x3bc   :  { %2042 = vmatpush3.bf16.msra.mxu1 %v2342_v6 }
 0x3bd   :  { %2043 = vmatprep.subr.bf16.mxu1 %v2138_v2 }
 0x3c0   :  { %2045 = vmatpush3.bf16.msra.mxu1 %v2352_v9 }
 0x3c1   :  { %2046 = vmatprep.subr.bf16.mxu1 %v2138_v2 }
 0x3c4   :  { %2048 = vmatpush3.bf16.msra.mxu1 %v2362_v12 }
 0x3c5   :  { %2049 = vmatprep.subr.bf16.mxu1 %v2138_v2 }
 0x3c8   :  { %2051 = vmatpush3.bf16.msra.mxu1 %v2375_v18 }
 0x3c9   :  { %2052 = vmatprep.subr.bf16.mxu1 %v2138_v2 }
 0x3cc   :  { %2054 = vmatpush3.bf16.msra.mxu1 %v2383_v20 }
 0x3cd   :  { %1938 = vmatprep.subr.mxu1 %v2139_v14 }
 0x482   :  { %v748_v19 = vpop.f32.mrb[6].mxu1 }
 0x483   :  { %v749_v21 = vadd.f32 1e-05, %v748_v19  ;;  %v1842_v22 = vpop.f32.mrb[7].mxu1 }
 0x485   :  { %2134 = vrsqrt.f32 %v749_v21 }
 0x48f   :  { %v2135_v25 = vpop.eup %2134 }
 0x490   :  { %v753_v26 = vmul.f32 %v2135_v25, %v50_v23  ;;  %v2127_v23 = vld [vmem:[%s2613_s2 + $0x88] sm:$0xff]  }
 0x492   :  { %v758_v27 = vrot.slane %v753_v26, %v2417_v40  ;;  %v2128_v26 = vld [vmem:[%s2613_s2 + $0x90] sm:$0xff]  }
 0x494   :  { %v760_v29 = vmul.f32 %v758_v27, %v2420_v44  ;;  %v761_v30 = vmul.f32 %v758_v27, %v2422_v46  ;;  %v763_v31 = vmul.f32 %v758_v27, %v2426_v49  ;;  %v762_v32 = vmul.f32 %v758_v27, %v2424_v47  ;;  %v2131_v27 = vld [vmem:[%s2613_s2 + $0xa8] sm:$0xff]  }
 0x496   :  { %v770_v33 = vadd.f32 %v1543_v28, %v760_v29  ;;  %v771_v34 = vadd.f32 %v1543_v28, %v761_v30  ;;  %v773_v37 = vadd.f32 %v1543_v28, %v763_v31  ;;  %v772_v38 = vadd.f32 %v1543_v28, %v762_v32  ;;  %v2132_v28 = vld [vmem:[%s2613_s2 + $0xb0] sm:$0xff]   ;;  %v2133_v29 = vld [vmem:[%s2613_s2 + $0xb8] sm:$0xff]  }
 0x498   :  { %v774_v41 = vmax.f32 %v770_v33, 0.0  ;;  %v775_v42 = vmax.f32 %v771_v34, 0.0  ;;  %v777_v43 = vmax.f32 %v773_v37, 0.0  ;;  %v776_v50 = vmax.f32 %v772_v38, 0.0 }
 0x49a   :  { %v797_v51 = vrot.slane %v774_v41, 7  ;;  %v798_v52 = vrot.slane %v775_v42, 7  ;;  %v800_v53 = vrot.slane %v777_v43, 7  ;;  %v799_v54 = vrot.slane %v776_v50, 7 }
 0x49b   :  { %v1021_v49 = vrot.slane %v774_v41, 1  ;;  %v1023_v56 = vrot.slane %v776_v50, 1  ;;  %v1024_v59 = vrot.slane %v777_v43, 1  ;;  %v1022_v11 = vrot.slane %v775_v42, 1 }
 0x49c   :  { %v804_v44 = vsel %vm150_vm0, %v800_v53, %v797_v51  ;;  %v802_v46 = vsel %vm150_vm0, %v798_v52, %v799_v54  ;;  %v803_v57 = vsel %vm150_vm0, %v797_v51, %v798_v52  ;;  %v801_v58 = vsel %vm150_vm0, %v799_v54, %v800_v53 }
 0x49d   :  { %v805_v47 = vmul.f32 %v2225_v15, %v804_v44  ;;  %v807_v55 = vmul.f32 %v2242_v24, %v802_v46  ;;  %v1025_v0 = vsel %vm332_vm5, %v1023_v56, %v1024_v59  ;;  %v1028_v15 = vsel %vm332_vm5, %v1024_v59, %v1021_v49 }
 0x49e   :  { %v778_v24 = vpack.c.bf16 %v775_v42, %v774_v41  ;;  %v1032_v1 = vmul.f32 %v2325_v60, %v1028_v15  ;;  %v2122_v60 = vld [vmem:[%s2613_s2 + $0x60] sm:$0xff]   ;;  %v1026_v16 = vsel %vm332_vm5, %v1022_v11, %v1023_v56  ;;  %v779_v21 = vpack.c.bf16 %v777_v43, %v776_v50 }
 0x49f   :  { %v809_v61 = vpack.c.bf16 %v803_v57, %v805_v47  ;;  %v810_v62 = vpack.c.bf16 %v801_v58, %v807_v55  ;;  %v1030_v19 = vmul.f32 %v2300_v48, %v1026_v16  ;;  %v1027_v22 = vsel %vm332_vm5, %v1021_v49, %v1022_v11  ;;  %v2130_v48 = vld [vmem:[%s2613_s2 + $0xa0] sm:$0xff]  }
 0x4a0   :  { %v1034_v3 = vpack.c.bf16 %v1032_v1, %v1025_v0 }
 0x4a1   :  { %1859 = vmatprep.mubr.bf16.mxu0 %v809_v61  ;;  %v1033_v25 = vpack.c.bf16 %v1030_v19, %v1027_v22 }
 0x4a2   :  { %1860 = vmatmul.mubr.bf16.vlgmr.msra.gmra.mrb[4].mxu0 %v810_v62 }
 0x4a3   :  { %1864 = vmatpush3.bf16.msra.mxu0 %v2118_v17  ;;  %1879 = vmatprep.mubr.bf16.mxu0 %v778_v24  ;;  %v2126_v17 = vld [vmem:[%s2613_s2 + $0x80] sm:$0xff]  }
 0x4a4   :  { %1865 = vmatprep.subr.bf16.mxu0 %v2119_v63 }
 0x4a7   :  { %1866 = vmatpush3.bf16.msra.mxu0 %v2119_v63 }
 0x4a8   :  { %1867 = vmatprep.subr.bf16.mxu0 %v2120_v5 }
 0x4ab   :  { %1868 = vmatpush3.bf16.msra.mxu0 %v2120_v5 }
 0x4ac   :  { %1869 = vmatprep.subr.bf16.mxu0 %v2121_v7 }
 0x4af   :  { %1870 = vmatpush3.bf16.msra.mxu0 %v2121_v7 }
 0x4b0   :  { %1871 = vmatprep.subr.bf16.mxu0 %v2122_v60 }
 0x4b3   :  { %1872 = vmatpush3.bf16.msra.mxu0 %v2122_v60 }
 0x4b4   :  { %1873 = vmatprep.subr.bf16.mxu0 %v2123_v8 }
 0x4b7   :  { %1874 = vmatpush3.bf16.msra.mxu0 %v2123_v8 }
 0x4b8   :  { %1875 = vmatprep.subr.bf16.mxu0 %v2124_v10 }
 0x4bb   :  { %1876 = vmatpush3.bf16.msra.mxu0 %v2124_v10 }
 0x4bc   :  { %1877 = vmatprep.subr.bf16.mxu0 %v2125_v13 }
 0x4bf   :  { %1878 = vmatpush3.bf16.msra.mxu0 %v2125_v13 }
 0x4c0   :  { %1883 = vmatprep.subr.bf16.mxu0 %v2126_v17 }
 0x4c2   :  { %1880 = vmatmul.mubr.bf16.vlgmr.msra.gmra.mrb[4].mxu0 %v779_v21 }
 0x4c3   :  { %1884 = vmatpush3.bf16.msra.mxu0 %v2126_v17  ;;  %1899 = vmatprep.mubr.bf16.mxu0 %v1033_v25 }
 0x4c4   :  { %1885 = vmatprep.subr.bf16.mxu0 %v2127_v23 }
 0x4c7   :  { %1886 = vmatpush3.bf16.msra.mxu0 %v2127_v23 }
 0x4c8   :  { %1887 = vmatprep.subr.bf16.mxu0 %v2128_v26 }
 0x4cb   :  { %1888 = vmatpush3.bf16.msra.mxu0 %v2128_v26 }
 0x4cc   :  { %1889 = vmatprep.subr.bf16.mxu0 %v2129_v4 }
 0x4cf   :  { %1890 = vmatpush3.bf16.msra.mxu0 %v2129_v4 }
 0x4d0   :  { %1891 = vmatprep.subr.bf16.mxu0 %v2130_v48 }
 0x4d3   :  { %1892 = vmatpush3.bf16.msra.mxu0 %v2130_v48 }
 0x4d4   :  { %1893 = vmatprep.subr.bf16.mxu0 %v2131_v27 }
 0x4d7   :  { %1894 = vmatpush3.bf16.msra.mxu0 %v2131_v27 }
 0x4d8   :  { %1895 = vmatprep.subr.bf16.mxu0 %v2132_v28 }
 0x4db   :  { %1896 = vmatpush3.bf16.msra.mxu0 %v2132_v28 }
 0x4dc   :  { %1897 = vmatprep.subr.bf16.mxu0 %v2133_v29 }
 0x4df   :  { %1898 = vmatpush3.bf16.msra.mxu0 %v2133_v29 }
 0x4e2   :  { %1900 = vmatmul.mubr.bf16.vlgmr.msra.gmra.mrb[4].mxu0 %v1034_v3  ;;  %v52_v3 = vld [vmem:[%s2616_s7] sm:$0x1] }
 0x5b5   :  { %v1901_v30 = vpop.f32.mrb[4].mxu0 }
 0x5b6   :  { %v1134_v31 = vpop.f32.mrb[5].mxu0 }
 0x5b7   :  { %v1902_v32 = vpop.f32.mrb[6].mxu0 }
 0x5b8   :  { %v1137_v33 = vpop.f32.mrb[7].mxu0 }
 0x5b9   :  { %v1153_v34 = vadd.f32 %v1137_v33, %v1134_v31 }
 0x5bb   :  { %v1154_v37 = vadd.f32 %v1901_v30, %v1153_v34 }
 0x5bd   :  { %v1155_v38 = vadd.f32 %v1902_v32, %v1154_v37 }
 0x5bf   :  { %v1156_v41 = vrot.slane %v1155_v38, 4 }
 0x5c1   :  { %v1157_v42 = vadd.f32 %v1156_v41, %v1155_v38 }
 0x5c3   :  { %v1158_v43 = vrot.slane %v1157_v42, 2 }
 0x5c5   :  { %v1159_v50 = vadd.f32 %v1158_v43, %v1157_v42 }
 0x5c7   :  { %v1160_v51 = vrot.slane %v1159_v50, 1 }
 0x5c9   :  { %v1161_v52 = vadd.f32 %v1160_v51, %v1159_v50 }
 0x5cb   :  { %1936 = vmatmul.mubr.f32.vlgmr.msra.gmra.mrb[8].mxu1 %v1161_v52 }
 0x5cc   :  { %1939 = vmatpush3.msra.mxu1 %v2391_v35  ;;  %1940 = vmatprep.mubr.msk.f32.mxu1 %vm2140_vm7, %v2139_v14 }
 0x5cd   :  { %2055 = vmatprep.subr.bf16.mxu1 %v2138_v2 }
 0x69e   :  { %v1228_v53 = vpop.f32.mrb[8].mxu1 }
 0x69f   :  { %v1937_v54 = vpop.f32.mrb[9].mxu1  ;;  %1941 = vmatmul.mubr.msk.f32.vlgmr.msra.gmra.mrb[10].mxu1 %vm514_vm8, %v1228_v53 }
 0x6a0   :  { %2057 = vmatpush3.bf16.msra.mxu1 %v2268_v36  ;;  %1975 = vmatprep.mubr.msk.f32.mxu1 %vm2140_vm7, %v2139_v14 }
 0x6a1   :  { %2058 = vmatprep.subr.bf16.mxu1 %v2138_v2 }
 0x6a4   :  { %2060 = vmatpush3.bf16.msra.mxu1 %v2275_v39 }
 0x6a5   :  { %2061 = vmatprep.subr.bf16.mxu1 %v2138_v2 }
 0x6a8   :  { %2063 = vmatpush3.bf16.msra.mxu1 %v2292_v45 }
 0x6a9   :  { %2064 = vmatprep.subr.bf16.mxu1 %v2138_v2 }
 0x6ac   :  { %2066 = vmatpush3.bf16.msra.mxu1 %v2342_v6 }
 0x6ad   :  { %2067 = vmatprep.subr.bf16.mxu1 %v2138_v2 }
 0x6b0   :  { %2069 = vmatpush3.bf16.msra.mxu1 %v2352_v9 }
 0x6b1   :  { %2070 = vmatprep.subr.bf16.mxu1 %v2138_v2 }
 0x6b4   :  { %2072 = vmatpush3.bf16.msra.mxu1 %v2362_v12 }
 0x6b5   :  { %2073 = vmatprep.subr.bf16.mxu1 %v2138_v2 }
 0x6b8   :  { %2075 = vmatpush3.bf16.msra.mxu1 %v2375_v18 }
 0x6b9   :  { %2076 = vmatprep.subr.bf16.mxu1 %v2138_v2 }
 0x6bc   :  { %2078 = vmatpush3.bf16.msra.mxu1 %v2383_v20 }
 0x6bd   :  { %1978 = vmatprep.subr.mxu1 %v2139_v14 }
 0x772   :  { %v1301_v36 = vpop.f32.mrb[10].mxu1 }
 0x773   :  { %v1308_v39 = vrot.slane %v1301_v36, %v2417_v40  ;;  %v1942_v45 = vpop.f32.mrb[11].mxu1 }
 0x775   :  { %v1309_v6 = vsub.f32 %v1134_v31, %v1308_v39  ;;  %v1310_v9 = vsub.f32 %v1137_v33, %v1308_v39  ;;  %v1311_v44 = vsub.f32 %v1901_v30, %v1308_v39  ;;  %v1312_v46 = vsub.f32 %v1902_v32, %v1308_v39 }
 0x777   :  { %v1313_v49 = vmul.f32 %v1309_v6, %v1309_v6  ;;  %v1314_v12 = vmul.f32 %v1310_v9, %v1310_v9  ;;  %v1315_v47 = vmul.f32 %v1311_v44, %v1311_v44  ;;  %v1316_v56 = vmul.f32 %v1312_v46, %v1312_v46 }
 0x779   :  { %v1317_v55 = vadd.f32 %v1314_v12, %v1313_v49 }
 0x77b   :  { %v1318_v18 = vadd.f32 %v1317_v55, %v1315_v47 }
 0x77d   :  { %v1319_v57 = vadd.f32 %v1318_v18, %v1316_v56 }
 0x77f   :  { %v1320_v2 = vrot.slane %v1319_v57, 4 }
 0x781   :  { %v1321_v58 = vadd.f32 %v1320_v2, %v1319_v57 }
 0x783   :  { %v1322_v20 = vrot.slane %v1321_v58, 2 }
 0x785   :  { %v1323_v59 = vadd.f32 %v1322_v20, %v1321_v58 }
 0x787   :  { %v1324_v61 = vrot.slane %v1323_v59, 1 }
 0x789   :  { %v1325_v62 = vadd.f32 %v1324_v61, %v1323_v59 }
 0x78b   :  { %1976 = vmatmul.mubr.f32.vlgmr.msra.gmra.mrb[12].mxu1 %v1325_v62 }
 0x78c   :  { %1979 = vmatpush3.msra.mxu1 %v2391_v35  ;;  %1980 = vmatprep.mubr.msk.f32.mxu1 %vm2140_vm7, %v2139_v14  ;;  %v1602_v14 = vld [vmem:[%s2617_s8] ss:$0 sm:$0xff] }
 0x85e   :  { %v1392_v63 = vpop.f32.mrb[12].mxu1 }
 0x85f   :  { %v1977_v0 = vpop.f32.mrb[13].mxu1  ;;  %1981 = vmatmul.mubr.msk.f32.vlgmr.msra.gmra.mrb[14].mxu1 %vm514_vm8, %v1392_v63 }
 0x932   :  { %v1465_v15 = vpop.f32.mrb[14].mxu1 }
 0x933   :  { %v1466_v24 = vadd.f32 1e-05, %v1465_v15  ;;  %v1982_v1 = vpop.f32.mrb[15].mxu1 }
 0x935   :  { %2136 = vrsqrt.f32 %v1466_v24 }
 0x93f   :  { %v2137_v5 = vpop.eup %2136 }
 0x940   :  { %v1470_v7 = vmul.f32 %v2137_v5, %v52_v3 }
 0x942   :  { %v1475_v60 = vrot.slane %v1470_v7, %v2417_v40 }
 0x944   :  { %v1477_v35 = vmul.f32 %v1475_v60, %v1309_v6  ;;  %v1478_v8 = vmul.f32 %v1475_v60, %v1310_v9  ;;  %v1479_v10 = vmul.f32 %v1475_v60, %v1311_v44  ;;  %v1480_v11 = vmul.f32 %v1475_v60, %v1312_v46 }
 0x946   :  { %v1487_v13 = vadd.f32 %v1602_v14, %v1477_v35  ;;  %v1488_v16 = vadd.f32 %v1602_v14, %v1478_v8  ;;  %v1489_v17 = vadd.f32 %v1602_v14, %v1479_v10  ;;  %v1490_v19 = vadd.f32 %v1602_v14, %v1480_v11 }
 0x948   :  { %v1491_v21 = vmax.f32 %v1487_v13, 0.0  ;;  %v1492_v22 = vmax.f32 %v1488_v16, 0.0  ;;  %v1493_v23 = vmax.f32 %v1489_v17, 0.0  ;;  %v1494_v25 = vmax.f32 %v1490_v19, 0.0 }
 0x94a   :  { %1495 = vst [vmem:[%s2618_s9] sm:$0xff] %v1491_v21  ;;  %1496 = vst [vmem:[%s2618_s9 + $0x8] sm:$0xff] %v1492_v22 }
 0x94b   :  { %1497 = vst [vmem:[%s2618_s9 + $0x10] sm:$0xff] %v1493_v23  ;;  %1498 = vst [vmem:[%s2618_s9 + $0x18] sm:$0xff] %v1494_v25 }

</bundles_post_ra>
